<compile_context>
chip_gen: v7x
topology: tpu7x:2x2x1
jax: 0.10.0
libtpu: 0.0.40
codegen_flags: <defaults>
</compile_context>

<pallas_src>
import functools
from math import sqrt

import jax
import jax.numpy as jnp
from jax.experimental import pallas as pl
from jax.experimental.pallas import tpu as pltpu

# torch.rrelu eval mode: negative slope = (lower + upper) / 2 = (1/8 + 1/3) / 2
RRELU_EVAL_SLOPE = (1.0 / 8.0 + 1.0 / 3.0) / 2.0

AUG_DIM = 2
D_IN = 2 + AUG_DIM                    # 4
DIMS = [D_IN, 32, 64, 32, 16, D_IN]   # fc1..fc5

# ---- packed-parameter blob layout -------------------------------------------
# One (P_ROWS, 128) array.  Layer i occupies rows [_ROW_OFF[i] : +out_i]:
#   weight (out_i, in_i) in lanes [0:in_i], bias column in lane in_i.
_ROW_OFF = []
_r = 0
for _i in range(5):
    _ROW_OFF.append(_r)
    _r += DIMS[_i + 1]
P_ROWS = ((_r + 7) // 8) * 8          # 148 -> 152 (sublane aligned)


def pack_params(params, dtype=jnp.bfloat16):
    """Pack fc1..fc5 (W (out,in), b (out,) or (out,1)) into one blob.

    Do this ONCE outside the solver loop; only matmul operands take `dtype`,
    accumulation stays f32 inside the kernel.
    """
    blob = jnp.zeros((P_ROWS, 128), dtype)
    for i, (w, b) in enumerate(params):
        r0 = _ROW_OFF[i]
        out_d, in_d = DIMS[i + 1], DIMS[i]
        assert w.shape == (out_d, in_d)
        blob = blob.at[r0:r0 + out_d, 0:in_d].set(w.astype(dtype))
        b_col = jnp.reshape(b, (out_d, 1)).astype(dtype)
        blob = blob.at[r0:r0 + out_d, in_d:in_d + 1].set(b_col)
    return blob


# ---- kernel ------------------------------------------------------------------
def odefunc_kernel(y_ref, p_ref, out_ref):
    # y_ref tile: (D_IN, tile_b) feature-major (batch on the 128-wide lanes).
    # p_ref:      (P_ROWS, 128) packed weights/biases, resident across grid.
    h = y_ref[...].astype(jnp.float32)
    for i in range(5):                                   # unrolled at trace time
        r0 = _ROW_OFF[i]
        out_d, in_d = DIMS[i + 1], DIMS[i]
        w = p_ref[r0:r0 + out_d, 0:in_d]                 # (out, in), blob dtype
        b = p_ref[r0:r0 + out_d, in_d:in_d + 1].astype(jnp.float32)  # (out, 1)
        # MXU operands in blob dtype (bf16 fast path), f32 accumulation.
        z = jnp.dot(w, h.astype(w.dtype),
                    preferred_element_type=jnp.float32) + b
        # eval-mode rrelu == leaky-relu; 0 < slope < 1 so max() is equivalent.
        h = jnp.maximum(z, RRELU_EVAL_SLOPE * z) if i < 4 else z
    out_ref[...] = h.astype(out_ref.dtype)


# ---- tiling helper -----------------------------------------------------------
def _effective_tile(B, tile_b):
    """Pick the batch tile: lane-aligned, >=2 grid steps when possible, and a
    divisor of B whenever B is a multiple of 128 (so no padding is needed)."""
    tile_b = max(128, (tile_b // 128) * 128)
    if B >= 256:
        half = -(-B // 2)
        half = -(-half // 128) * 128
        tile_b = min(tile_b, half)
    else:
        tile_b = 128
    if B % 128 == 0:
        while tile_b > 128 and B % tile_b != 0:
            tile_b -= 128
    return tile_b


# ---- wrappers ----------------------------------------------------------------
@functools.partial(jax.jit, static_argnames=("tile_b", "core_parallel"))
def odefunc_forward_fm(t, y_fm, param_blob, *, tile_b=2048, core_parallel=False):
    """Feature-major forward: y_fm is (D_IN, B); returns (D_IN, B).

    Keep the ODE state feature-major across the solver loop and call this
    directly — no transpose/pad HBM round trips per evaluation (padding only
    happens when B is not a multiple of 128).
    """
    del t  # PyTorch forward ignores t
    D, B = y_fm.shape
    assert D == D_IN
    tb = _effective_tile(B, tile_b)
    n_tiles = pl.cdiv(B, tb)
    Bp = n_tiles * tb
    y_in = y_fm if Bp == B else jnp.pad(y_fm, ((0, 0), (0, Bp - B)))

    sem = (pltpu.CORE_PARALLEL,) if core_parallel else ("parallel",)

    out = pl.pallas_call(
        odefunc_kernel,
        out_shape=jax.ShapeDtypeStruct((D_IN, Bp), y_fm.dtype),
        grid_spec=pltpu.PrefetchScalarGridSpec(
            num_scalar_prefetch=0,
            grid=(n_tiles,),
            in_specs=[
                pl.BlockSpec((D_IN, tb), lambda i: (0, i)),      # activations
                pl.BlockSpec((P_ROWS, 128), lambda i: (0, 0)),   # param blob (resident)
            ],
            out_specs=pl.BlockSpec((D_IN, tb), lambda i: (0, i)),
        ),
        compiler_params=pltpu.CompilerParams(dimension_semantics=sem),
    )(y_in, param_blob)

    return out if Bp == B else out[:, :B]


@functools.partial(jax.jit, static_argnames=("tile_b", "core_parallel"))
def odefunc_forward(t, y_aug, param_blob, *, tile_b=2048, core_parallel=False):
    """Batch-major convenience wrapper: y_aug is (B, D_IN).  Use only at the
    solve boundary; inside a solver loop prefer odefunc_forward_fm."""
    out_fm = odefunc_forward_fm(t, y_aug.T, param_blob,
                                tile_b=tile_b, core_parallel=core_parallel)
    return out_fm.T


# ---- init & reference --------------------------------------------------------
def init_params(key):
    """PyTorch nn.Linear-style init: U(-1/sqrt(fan_in), +1/sqrt(fan_in)).
    Weights (out, in), biases (out, 1)."""
    params = []
    for i in range(5):
        fan_in, fan_out = DIMS[i], DIMS[i + 1]
        key, kw, kb = jax.random.split(key, 3)
        bound = 1.0 / sqrt(fan_in)
        w = jax.random.uniform(kw, (fan_out, fan_in), jnp.float32, -bound, bound)
        b = jax.random.uniform(kb, (fan_out, 1), jnp.float32, -bound, bound)
        params.append((w, b))
    return params


def reference_forward(t, y, params, operand_dtype=jnp.float32):
    """Pure-JAX reference with the same operand rounding as the kernel."""
    del t
    h = y.astype(jnp.float32)
    for i, (w, b) in enumerate(params):
        w_o = w.astype(operand_dtype)
        b_o = jnp.reshape(b, (-1,)).astype(operand_dtype).astype(jnp.float32)
        z = jnp.dot(h.astype(operand_dtype), w_o.T,
                    preferred_element_type=jnp.float32) + b_o
        h = jnp.maximum(z, RRELU_EVAL_SLOPE * z) if i < 4 else z
    return h


if __name__ == "__main__":
    key = jax.random.PRNGKey(0)
    kp, kx1, kx2 = jax.random.split(key, 3)
    params = init_params(kp)
    t = jnp.zeros((), jnp.float32)  # unused, API parity with PyTorch forward

    # --- fast path: bf16 matmul operands, feature-major state, B=512 ---------
    # Auto-tiling gives tile_b=256 -> 2 grid steps, no padding.
    B1 = 512
    y1 = jax.random.normal(kx1, (B1, D_IN), jnp.float32)
    blob_bf16 = pack_params(params, jnp.bfloat16)
    out1_fm = jax.block_until_ready(odefunc_forward_fm(t, y1.T, blob_bf16))
    ref1 = reference_forward(t, y1, params, operand_dtype=jnp.bfloat16)
    assert out1_fm.shape == (D_IN, B1)
    assert jnp.allclose(out1_fm.T, ref1, atol=2e-3, rtol=2e-3), \
        "bf16 fast path mismatch vs reference"

    # --- f32 path, ragged batch (exercises padding) via batch-major wrapper ---
    B2 = 300
    y2 = jax.random.normal(kx2, (B2, D_IN), jnp.float32)
    blob_f32 = pack_params(params, jnp.float32)
    out2 = jax.block_until_ready(odefunc_forward(t, y2, blob_f32, tile_b=128))
    ref2 = reference_forward(t, y2, params, operand_dtype=jnp.float32)
    assert out2.shape == (B2, D_IN)
    assert jnp.allclose(out2, ref2, atol=1e-4, rtol=1e-4), \
        "f32 ragged path mismatch vs reference"

    print("KERNEL_OK")
</pallas_src>

<mosaic_0001>
module attributes {stable_mosaic.version = 11 : i64} {
  func.func @odefunc_kernel(%arg0: i32, %arg1: memref<4x256xf32, #tpu.memory_space<vmem>>, %arg2: memref<152x128xbf16, #tpu.memory_space<vmem>>, %arg3: memref<4x256xf32, #tpu.memory_space<vmem>>) attributes {dimension_semantics = [#tpu.dimension_semantics<parallel>], iteration_bounds = array<i64: 2>, scalar_prefetch = 0 : i64, scratch_operands = 0 : i64, tpu.core_type = #tpu.core_type<tc>, window_params = [{transform_indices = @transform_0, window_bounds = array<i64: 4, 256>}, {pipeline_mode = #tpu.pipeline_mode<synchronous>, transform_indices = @transform_1, window_bounds = array<i64: 152, 128>}, {transform_indices = @transform_2, window_bounds = array<i64: 4, 256>}]} {
    %c0 = arith.constant 0 : index
    %c0_0 = arith.constant 0 : index
    %0 = vector.load %arg1[%c0, %c0_0] : memref<4x256xf32, #tpu.memory_space<vmem>>, vector<4x256xf32>
    %c0_1 = arith.constant 0 : index
    %c0_2 = arith.constant 0 : index
    %1 = vector.load %arg2[%c0_1, %c0_2] : memref<152x128xbf16, #tpu.memory_space<vmem>>, vector<32x4xbf16>
    %c0_3 = arith.constant 0 : index
    %c4 = arith.constant 4 : index
    %2 = vector.load %arg2[%c0_3, %c4] : memref<152x128xbf16, #tpu.memory_space<vmem>>, vector<32x1xbf16>
    %3 = arith.extf %2 : vector<32x1xbf16> to vector<32x1xf32>
    %4 = arith.truncf %0 : vector<4x256xf32> to vector<4x256xbf16>
    %cst = arith.constant dense<0.000000e+00> : vector<32x256xf32>
    %5 = tpu.matmul %1, %4, %cst {dimension_numbers = #tpu.dot_dimension_numbers<[1], [0], [0], [1], [0, 0, 1, 1], [], []>} : vector<32x4xbf16>, vector<4x256xbf16>, vector<32x256xf32> -> vector<32x256xf32>
    %6 = vector.broadcast %3 : vector<32x1xf32> to vector<32x256xf32>
    %7 = arith.addf %5, %6 : vector<32x256xf32>
    %cst_4 = arith.constant 0.229166672 : f32
    %8 = vector.broadcast %cst_4 : f32 to vector<32x256xf32>
    %9 = arith.mulf %8, %7 : vector<32x256xf32>
    %10 = arith.maximumf %7, %9 : vector<32x256xf32>
    %c32 = arith.constant 32 : index
    %c0_5 = arith.constant 0 : index
    %11 = vector.load %arg2[%c32, %c0_5] : memref<152x128xbf16, #tpu.memory_space<vmem>>, vector<64x32xbf16>
    %c32_6 = arith.constant 32 : index
    %c32_7 = arith.constant 32 : index
    %12 = vector.load %arg2[%c32_6, %c32_7] : memref<152x128xbf16, #tpu.memory_space<vmem>>, vector<64x1xbf16>
    %13 = arith.extf %12 : vector<64x1xbf16> to vector<64x1xf32>
    %14 = arith.truncf %10 : vector<32x256xf32> to vector<32x256xbf16>
    %cst_8 = arith.constant dense<0.000000e+00> : vector<64x256xf32>
    %15 = tpu.matmul %11, %14, %cst_8 {dimension_numbers = #tpu.dot_dimension_numbers<[1], [0], [0], [1], [0, 0, 1, 1], [], []>} : vector<64x32xbf16>, vector<32x256xbf16>, vector<64x256xf32> -> vector<64x256xf32>
    %16 = vector.broadcast %13 : vector<64x1xf32> to vector<64x256xf32>
    %17 = arith.addf %15, %16 : vector<64x256xf32>
    %cst_9 = arith.constant 0.229166672 : f32
    %18 = vector.broadcast %cst_9 : f32 to vector<64x256xf32>
    %19 = arith.mulf %18, %17 : vector<64x256xf32>
    %20 = arith.maximumf %17, %19 : vector<64x256xf32>
    %c96 = arith.constant 96 : index
    %c0_10 = arith.constant 0 : index
    %21 = vector.load %arg2[%c96, %c0_10] : memref<152x128xbf16, #tpu.memory_space<vmem>>, vector<32x64xbf16>
    %c96_11 = arith.constant 96 : index
    %c64 = arith.constant 64 : index
    %22 = vector.load %arg2[%c96_11, %c64] : memref<152x128xbf16, #tpu.memory_space<vmem>>, vector<32x1xbf16>
    %23 = arith.extf %22 : vector<32x1xbf16> to vector<32x1xf32>
    %24 = arith.truncf %20 : vector<64x256xf32> to vector<64x256xbf16>
    %cst_12 = arith.constant dense<0.000000e+00> : vector<32x256xf32>
    %25 = tpu.matmul %21, %24, %cst_12 {dimension_numbers = #tpu.dot_dimension_numbers<[1], [0], [0], [1], [0, 0, 1, 1], [], []>} : vector<32x64xbf16>, vector<64x256xbf16>, vector<32x256xf32> -> vector<32x256xf32>
    %26 = vector.broadcast %23 : vector<32x1xf32> to vector<32x256xf32>
    %27 = arith.addf %25, %26 : vector<32x256xf32>
    %cst_13 = arith.constant 0.229166672 : f32
    %28 = vector.broadcast %cst_13 : f32 to vector<32x256xf32>
    %29 = arith.mulf %28, %27 : vector<32x256xf32>
    %30 = arith.maximumf %27, %29 : vector<32x256xf32>
    %c128 = arith.constant 128 : index
    %c0_14 = arith.constant 0 : index
    %31 = vector.load %arg2[%c128, %c0_14] : memref<152x128xbf16, #tpu.memory_space<vmem>>, vector<16x32xbf16>
    %c128_15 = arith.constant 128 : index
    %c32_16 = arith.constant 32 : index
    %32 = vector.load %arg2[%c128_15, %c32_16] : memref<152x128xbf16, #tpu.memory_space<vmem>>, vector<16x1xbf16>
    %33 = arith.extf %32 : vector<16x1xbf16> to vector<16x1xf32>
    %34 = arith.truncf %30 : vector<32x256xf32> to vector<32x256xbf16>
    %cst_17 = arith.constant dense<0.000000e+00> : vector<16x256xf32>
    %35 = tpu.matmul %31, %34, %cst_17 {dimension_numbers = #tpu.dot_dimension_numbers<[1], [0], [0], [1], [0, 0, 1, 1], [], []>} : vector<16x32xbf16>, vector<32x256xbf16>, vector<16x256xf32> -> vector<16x256xf32>
    %36 = vector.broadcast %33 : vector<16x1xf32> to vector<16x256xf32>
    %37 = arith.addf %35, %36 : vector<16x256xf32>
    %cst_18 = arith.constant 0.229166672 : f32
    %38 = vector.broadcast %cst_18 : f32 to vector<16x256xf32>
    %39 = arith.mulf %38, %37 : vector<16x256xf32>
    %40 = arith.maximumf %37, %39 : vector<16x256xf32>
    %c144 = arith.constant 144 : index
    %c0_19 = arith.constant 0 : index
    %41 = vector.load %arg2[%c144, %c0_19] : memref<152x128xbf16, #tpu.memory_space<vmem>>, vector<4x16xbf16>
    %c144_20 = arith.constant 144 : index
    %c16 = arith.constant 16 : index
    %42 = vector.load %arg2[%c144_20, %c16] : memref<152x128xbf16, #tpu.memory_space<vmem>>, vector<4x1xbf16>
    %43 = arith.extf %42 : vector<4x1xbf16> to vector<4x1xf32>
    %44 = arith.truncf %40 : vector<16x256xf32> to vector<16x256xbf16>
    %cst_21 = arith.constant dense<0.000000e+00> : vector<4x256xf32>
    %45 = tpu.matmul %41, %44, %cst_21 {dimension_numbers = #tpu.dot_dimension_numbers<[1], [0], [0], [1], [0, 0, 1, 1], [], []>} : vector<4x16xbf16>, vector<16x256xbf16>, vector<4x256xf32> -> vector<4x256xf32>
    %46 = vector.broadcast %43 : vector<4x1xf32> to vector<4x256xf32>
    %47 = arith.addf %45, %46 : vector<4x256xf32>
    %c0_22 = arith.constant 0 : index
    %c0_23 = arith.constant 0 : index
    %48 = vector.load %arg3[%c0_22, %c0_23] : memref<4x256xf32, #tpu.memory_space<vmem>>, vector<4x256xf32>
    tpu.vector_store %arg3[%c0_22, %c0_23], %47 {strides = array<i32>} : memref<4x256xf32, #tpu.memory_space<vmem>>, vector<4x256xf32>,
    return
  }
  func.func @transform_0(%arg0: i32) -> (i32, i32) {
    %c0_i32 = arith.constant 0 : i32
    %c0_i32_0 = arith.constant 0 : i32
    return %c0_i32, %arg0 : i32, i32
  }
  func.func @transform_1(%arg0: i32) -> (i32, i32) {
    %c0_i32 = arith.constant 0 : i32
    %c0_i32_0 = arith.constant 0 : i32
    %c0_i32_1 = arith.constant 0 : i32
    return %c0_i32, %c0_i32_0 : i32, i32
  }
  func.func @transform_2(%arg0: i32) -> (i32, i32) {
    %c0_i32 = arith.constant 0 : i32
    %c0_i32_0 = arith.constant 0 : i32
    return %c0_i32, %arg0 : i32, i32
  }
}

</mosaic_0001>

<bundles_post_ra>
// kernel: odefunc_forward_fm.1
= control target key start
LH: loop header
LB: loop body
LE: loop exit
PB: predicated region body
PF: predicated region fallthrough
CT: control target
= control target key end

     0   :  { %7 = vsyncpa [#allocation3], 0  ;;  %s1433_s0 = inlined_call_operand.hbm [shape: f32[4,512], index: 0, kind: input, shape index: {}]   ;;  %s1434_s1 = inlined_call_operand.hbm [shape: bf16[152,128], index: 1, kind: input, shape index: {}]   ;;  %s1435_s2 = inlined_call_operand.hbm [shape: f32[4,512], index: 2, kind: output, shape index: {}]  }
   0x1   :  { %9 = vsyncpa [#allocation3 + $0x1], 0 }
   0x2   :  { %10 = vsyncpa [#allocation6], 0 }
   0x3   :  { %11 = vsyncpa [#allocation4], 0 }
   0x4   :  { %13 = vsyncpa [#allocation4 + $0x1], 0  ;;  %s1185_s9 = smov 0   ;;  %s1187_s10 = smov 0  }
   0x5   :  { %s1189_s11 = smov 0   ;;  %s1191_s12 = smov 0  }
   0x6 LB: > { %s1206_s13 = sadd.s32 4294967295, %s1158_s12   ;;  %s856_s14 = sadd.s32 4294967294, %s1158_s12   ;;  %s1158_s12 = sphi %s1191_s12, %s1455_s12   ;;  %s1154_s11 = sphi %s1189_s11, %s1454_s11   ;;  %s1150_s10 = sphi %s1187_s10, %s1453_s10   ;;  %s1146_s9 = sphi %s1185_s9, %s1452_s9  }
   0x7   : > { %p39_p0 = scmp.ne.s32.totalorder %s1150_s10, %s1146_s9  ;;  %p1436_p1 = scmp.eq.s32.totalorder %s1206_s13, 0 }
   0x8   : > { %p90_p3 = scmp.eq.s32.totalorder %s856_s14, 1  ;;  %p857_p5 = scmp.ge.s32.totalorder %s1158_s12, 1 }
   0x9   : > { %p1215_p4 = por %p1436_p1, %p39_p0  ;;  %p97_p7 = scmp.lt.s32.totalorder %s1158_s12, 3 }
   0xa   : > { %p1220_p6 = por %p90_p3, %p39_p0  ;;  %s1160_s18 = smov [#allocation5]  }
   0xb   : > { %s1439_s15 = scalar_select %p1215_p4, 1, 0 }
   0xc   : > { %s1440_s16 = scalar_select %p1220_p6, 1, 0 }
   0xd   : > { %p1225_p8 = pnand %p857_p5, %p97_p7  ;;  %s109_s19 = sshll.u32 %s1160_s18, 4  ;;  %s1229_s19 = int_to_ptr.vmem [resolvable:$true] %s109_s19 }
   0xe   : > { %s1241_s21 = sadd.s32 1, %s1158_s12   ;;  %s26_s22 = sadd.s32 1, %s1154_s11 }
   0xf   : > { %s1441_s17 = scalar_select %p1225_p8, 1, 0 }
  0x10   : > { %p902_p9 = pneg %p1225_p8  ;;  %s23_s23 = ssub.s32 %s1158_s12, %s1241_s21 }
  0x11   : > { %s1030_s26 = scalar_lea.hbm %s1434_s1, 1216 }
  0x12   : > { %p1236_p11 = pnand %p902_p9, %p1436_p1  ;;  %p1031_p12 = scmp.ne.s32.totalorder %s1434_s1, %s1030_s26 }
  0x13   : > { %p1037_p5 = scmp.lt.u32.totalorder %s1030_s26, %s1434_s1 }
  0x14   : > { %p1032_p13 = pneg %p1236_p11 }
  0x16   : > { %p1033_p0 = pnand %p1032_p13, %p1031_p12 }
  0x18   : > { %p1034_p3 = pneg %p1033_p0 }
  0x1a   : > { %p1039_p7 = pnand %p1037_p5, %p1034_p3 }
  0x1c   : > { %1042 = shalt.err (!%p1039_p7)
}
  0x1d   : > { %s1043_s3 = scalar_lea.vmem %s1229_s19, 1216  ;;  %p1051_p2 = scmp.lt.s32.totalorder %s1229_s19, %s1229_s19 }
  0x1e   : > { %p1044_p9 = scmp.ne.s32.totalorder %s1229_s19, %s1043_s3  ;;  %p1052_p6 = scmp.lt.s32.totalorder %s1043_s3, %s1043_s3 }
  0x20   : > { %p1046_p10 = pnand %p1044_p9, %p1032_p13  ;;  %p1053_p4 = por %p1052_p6, %p1051_p2 }
  0x22   : > { %p1047_p1 = pneg %p1046_p10 }
  0x24   : > { %p1054_p8 = pnand %p1053_p4, %p1047_p1 }
  0x26   : > { %1057 = shalt.err (!%p1054_p8)
}
  0x27   : > { %s1161_s4 = smov 64   ;;  %s1162_s5 = smov 4  }
  0x28   : > { %905 = dma.hbm_to_vmem [thread:$0]  (!%p1236_p11), %s1434_s1, 1216, %s1229_s19, [#allocation6], %s1161_s4, %s1161_s4, %s1162_s5  }
  0x29   : > { %p24_p2 = scmp.eq.s32.totalorder %s23_s23, 0  ;;  %p33_p1 = scmp.ne.s32.totalorder %s1154_s11, %s1150_s10 }
  0x2a   : > { %p34_p4 = scmp.eq.s32.totalorder %s1158_s12, 0  ;;  %p915_p6 = scmp.lt.s32.totalorder %s1158_s12, 2 }
  0x2b   : > { %s1272_s8 = scalar_select %p24_p2, %s1154_s11, %s26_s22  }
  0x2c   : > { %p35_p8 = por %p34_p4, %p33_p1  ;;  %p1443_p10 = scmp.eq.s32.totalorder %s1206_s13, 1 }
  0x2d   : > { %s123_s18 = sand.u32 1, %s1154_s11   ;;  %s892_s24 = sshll.u32 %s1158_s12, 7 }
  0x2e   : > { %p1276_p12 = por %p1443_p10, %p33_p1  ;;  %s860_s25 = sshll.u32 %s123_s18, 3 }
  0x2f   : > { %s1285_s27 = scalar_lea.hbm %s1433_s0, %s892_s24  ;;  %s127_s19 = scalar_lea.vmem [#allocation2], %s860_s25 }
  0x30   : > { %s135_s22 = sshll.u32 %s127_s19, 4  ;;  %p1287_p11 = pnand %p915_p6, %p35_p8  ;;  %s1291_s22 = int_to_ptr.vmem [resolvable:$true] %s135_s22 }
  0x31   : > { %s124_s28 = scalar_lea.sflag [#allocation3], %s123_s18  ;;  %s1058_s29 = scalar_lea.hbm %s1285_s27, 128 }
  0x32   : > { %p1059_p13 = scmp.ne.s32.totalorder %s1285_s27, %s1058_s29  ;;  %p1060_p0 = pneg %p1287_p11 }
  0x33   : > { %s1063_s4 = scalar_lea.hbm %s1433_s0, 256  ;;  %p1064_p7 = scmp.lt.u32.totalorder %s1285_s27, %s1433_s0 }
  0x34   : > { %p1061_p3 = pnand %p1060_p0, %p1059_p13  ;;  %p1065_p9 = scmp.lt.u32.totalorder %s1063_s4, %s1058_s29 }
  0x35   : > { %p1067_p1 = scmp.lt.u32.totalorder %s1058_s29, %s1285_s27 }
  0x36   : > { %p1062_p5 = pneg %p1061_p3  ;;  %p1066_p2 = por %p1065_p9, %p1064_p7 }
  0x38   : > { %p1068_p4 = por %p1067_p1, %p1066_p2 }
  0x3a   : > { %p1069_p6 = pnand %p1068_p4, %p1062_p5 }
  0x3c   : > { %1072 = shalt.err (!%p1069_p6)
}
  0x3d   : > { %s1073_s7 = scalar_lea.vmem %s1291_s22, 128  ;;  %s1163_s18 = smov [#allocation2]  }
  0x3e   : > { %p1074_p8 = scmp.ne.s32.totalorder %s1291_s22, %s1073_s7  ;;  %s1078_s24 = sshll.u32 %s1163_s18, 4  ;;  %s1079_s24 = int_to_ptr.vmem [resolvable:$false] %s1078_s24 }
  0x3f   : > { %s1080_s25 = scalar_lea.vmem %s1079_s24, 256  ;;  %p1081_p3 = scmp.lt.s32.totalorder %s1291_s22, %s1079_s24 }
  0x40   : > { %p1076_p10 = pnand %p1074_p8, %p1060_p0  ;;  %p1082_p7 = scmp.lt.s32.totalorder %s1080_s25, %s1073_s7 }
  0x42   : > { %p1077_p13 = pneg %p1076_p10  ;;  %p1083_p9 = por %p1082_p7, %p1081_p3 }
  0x44   : > { %p1084_p2 = pnand %p1083_p9, %p1077_p13 }
  0x46   : > { %1087 = shalt.err (!%p1084_p2)
}
  0x47   : > { %909 = dma.hbm_to_vmem [thread:$0]  (!%p1287_p11), %s1285_s27, 128, %s1291_s22, %s124_s28  }
  0x48   : > { %p1446_p5 = scmp.ne.s32.totalorder %s1441_s17, 0 }
  0x49   : > { %s1321_s20 = sand.u32 (!%p1446_p5), 1, %s1150_s10   ;;  %p1447_p0 = scmp.ne.s32.totalorder (!%p1446_p5), %s1439_s15, 0 }
  0x4a   : > { %144 = sbr.rel (%p1446_p5) target bundleno = 1273 (0x4f9), region = 28  ;;  %s864_s26 = sshll.u32 (!%p1446_p5), %s1321_s20, 3 }
  0x4b   : > { %s147_s19 = scalar_lea.sflag (!%p1446_p5), [#allocation3], %s1321_s20  ;;  %s150_s29 = scalar_lea.vmem (!%p1446_p5), [#allocation2], %s864_s26 }
  0x51   : > { %1133 = dma.done.wait (%p1447_p0), %s147_s19, 128  }
  0x52   : > { %1135 = vsyncadd (%p1447_p0), %s147_s19, 4294967168  ;;  %p1448_p11 = scmp.eq.s32.totalorder %s1206_s13, 0 }
  0x54   : > { %1137 = dma.done.wait (%p1448_p11), [#allocation6], 1216   ;;  %p1449_p1 = pmov %p1448_p11 }
  0x55   : > { %v1164_v0 = vmov 0   ;;  %v1165_v1 = vmov 4   ;;  %v178_v2 = vld [vmem:[%s150_s29] sm:$0xff]  ;;  %vm229_vm0 = vcmask 1041408   ;;  %v179_v5 = vld [vmem:[#allocation5] sm:$0xff]   ;;  %v181_v6 = vld [vmem:[#allocation5 + $0x8] sm:$0xff]  }
  0x56   : > { %1139 = vsyncadd (%p1449_p1), [#allocation6], 4294966080  ;;  %268 = vmatprep.mubr.bf16.mxu0 %v1164_v0  ;;  %958 = vset.pattern.permute.xlu0 %v1165_v1  ;;  %v188_v3 = vcombine.high %v178_v2, %v178_v2  ;;  %v190_v4 = vpack.c.bf16 %v178_v2, %v178_v2  ;;  %v183_v7 = vunpack.c.l.bf16 %v179_v5  ;;  %v184_v8 = vunpack.c.h.bf16 %v179_v5  ;;  %v1339_v15 = vld [vmem:[#allocation5 + $0x10] sm:$0xff]   ;;  %v1341_v16 = vld [vmem:[#allocation5 + $0x18] sm:$0xff]   ;;  %s893_s15 = sshll.u32 %s1206_s13, 7  ;;  %s174_s17 = scalar_lea.vmem [#allocation7], %s864_s26 }
  0x57   : > { %430 = vmatprep.mubr.bf16.mxu1 %v1164_v0  ;;  %v185_v9 = vunpack.c.l.bf16 %v181_v6  ;;  %v186_v10 = vunpack.c.h.bf16 %v181_v6  ;;  %vm222_vm1 = vcmask 31744   ;;  %v1343_v17 = vld [vmem:[#allocation5 + $0x20] sm:$0xff]   ;;  %v313_v18 = vunpack.c.l.bf16 %v1339_v15  ;;  %v1353_v26 = vld [vmem:[#allocation5 + $0x28] sm:$0xff]   ;;  %s776_s27 = sshll.u32 %s174_s17, 4  ;;  %s1389_s28 = scalar_lea.hbm %s1435_s2, %s893_s15  ;;  %s1391_s27 = int_to_ptr.vmem [resolvable:$true] %s776_s27 }
  0x58   : > { %v191_v11 = vpack.c.bf16 %v188_v3, %v188_v3  ;;  %v231_v12 = vsel %vm229_vm0, %v190_v4, 0  ;;  %v959_v13 = vpack.i.bf16 %v184_v8, %v183_v7  ;;  %v314_v19 = vunpack.c.h.bf16 %v1339_v15  ;;  %s762_s30 = scalar_lea.sflag [#allocation4], %s1321_s20  ;;  %s1088_s13 = scalar_lea.vmem %s1391_s27, 128 }
  0x59   : > { %v964_v14 = vpack.i.bf16 %v186_v10, %v185_v9  ;;  %v315_v20 = vunpack.c.l.bf16 %v1341_v16  ;;  %v1166_v21 = vmov 32   ;;  %v316_v22 = vunpack.c.h.bf16 %v1341_v16  ;;  %p1089_p4 = scmp.ne.s32.totalorder %s1391_s27, %s1088_s13  ;;  %s1169_s3 = smov [#allocation7]  }
  0x5a   : > { %869 = vmatprep.subr.msk.bf16.mxu0 %vm229_vm0, %v191_v11  ;;  %960 = vperm.xlu0 %958, %v959_v13   ;;  %v317_v23 = vunpack.c.l.bf16 %v1343_v17  ;;  %v970_v24 = vpack.i.bf16 %v314_v19, %v313_v18  ;;  %v318_v25 = vunpack.c.h.bf16 %v1343_v17  ;;  %v319_v28 = vunpack.c.l.bf16 %v1353_v26  ;;  %v1369_v11 = vld [vmem:[#allocation5 + $0x30] sm:$0xff]   ;;  %s1092_s4 = sshll.u32 %s1169_s3, 4  ;;  %s1093_s4 = int_to_ptr.vmem [resolvable:$false] %s1092_s4 }
  0x5b   : > { %237 = vmatpush1.bf16.msra.mxu0 %v231_v12  ;;  %969 = vset.pattern.permute.xlu1 %v1166_v21  ;;  %v975_v27 = vpack.i.bf16 %v316_v22, %v315_v20  ;;  %v320_v29 = vunpack.c.h.bf16 %v1353_v26  ;;  %vm385_vm2 = vcmask 261120   ;;  %v1371_v12 = vld [vmem:[#allocation5 + $0x38] sm:$0xff]   ;;  %v507_v13 = vunpack.c.l.bf16 %v1369_v11  ;;  %p1090_p6 = pnand %p1089_p4, %p1276_p12  ;;  %s1094_s5 = scalar_lea.vmem %s1093_s4, 256 }
  0x5c   : > { %971 = vperm.xlu1 %969, %v970_v24   ;;  %v981_v30 = vpack.i.bf16 %v318_v25, %v317_v23  ;;  %vm549_vm3 = vcmask 523264   ;;  %vm711_vm4 = vcmask 130048   ;;  %p1095_p10 = scmp.lt.s32.totalorder %s1391_s27, %s1093_s4  ;;  %p1096_p13 = scmp.lt.s32.totalorder %s1094_s5, %s1088_s13 }
  0x5d   : > { %v986_v31 = vpack.i.bf16 %v320_v29, %v319_v28  ;;  %p1091_p8 = pneg %p1090_p6 }
  0x5e   : > { %870 = vmatmul.mubr.msk.bf16.vlgmr.msra.gmra.mrb[0].mxu0 %vm222_vm1, %v179_v5  ;;  %965 = vperm.xlu0 %958, %v964_v14   ;;  %v508_v14 = vunpack.c.h.bf16 %v1369_v11  ;;  %p1097_p3 = por %p1096_p13, %p1095_p10 }
  0x5f   : > { %278 = vmatprep.mubr.bf16.mxu0 %v1164_v0 }
  0x60   : > { %976 = vperm.xlu1 %969, %v975_v27   ;;  %v992_v18 = vpack.i.bf16 %v508_v14, %v507_v13  ;;  %p1098_p7 = pnand %p1097_p3, %p1091_p8 }
  0x62   : > { %980 = vset.pattern.permute.xlu0 %v1166_v21 }
  0x63   : > { %982 = vperm.xlu0 %980, %v981_v30  }
  0x64   : > { %987 = vperm.xlu1 %969, %v986_v31  }
  0x66   : > { %871 = vmatmul.mubr.msk.bf16.gmra.mrb[4].mxu0 %vm222_vm1, %v181_v6 }
  0x67   : > { %588 = vmatprep.mubr.bf16.mxu0 %v1164_v0 }
  0xd9   : > { %v961_v32 = vpop.permute.xlu0 %960 }
  0xda   : > { %v962_v33 = vunpack.i.l.bf16 %v961_v32  ;;  %v963_v34 = vunpack.i.h.bf16 %v961_v32 }
  0xdb   : > { %v972_v20 = vpop.permute.xlu1 %971 }
  0xdc   : > { %v973_v22 = vunpack.i.l.bf16 %v972_v20  ;;  %v974_v23 = vunpack.i.h.bf16 %v972_v20 }
  0xdd   : > { %v966_v40 = vpop.permute.xlu0 %965 }
  0xde   : > { %v967_v47 = vunpack.i.l.bf16 %v966_v40  ;;  %v968_v54 = vunpack.i.h.bf16 %v966_v40 }
  0xdf   : > { %v977_v29 = vpop.permute.xlu1 %976 }
 0x131   : > { %v270_v35 = vpop.f32.mrb[0].mxu0 }
 0x132   : > { %v271_v36 = vadd.f32 %v962_v33, %v270_v35  ;;  %v272_v37 = vpop.f32.mrb[1].mxu0 }
 0x133   : > { %v273_v38 = vadd.f32 %v962_v33, %v272_v37  ;;  %v274_v39 = vpop.f32.mrb[2].mxu0 }
 0x134   : > { %v289_v41 = vmul.f32 0.22916667, %v271_v36  ;;  %v275_v42 = vadd.f32 %v963_v34, %v274_v39  ;;  %v276_v43 = vpop.f32.mrb[3].mxu0 }
 0x135   : > { %v290_v44 = vmul.f32 0.22916667, %v273_v38  ;;  %v277_v45 = vadd.f32 %v963_v34, %v276_v43 }
 0x136   : > { %v291_v46 = vmul.f32 0.22916667, %v275_v42  ;;  %v297_v49 = vmax.f32 %v271_v36, %v289_v41  ;;  %v978_v36 = vunpack.i.l.bf16 %v977_v29 }
 0x137   : > { %v292_v48 = vmul.f32 0.22916667, %v277_v45  ;;  %v298_v52 = vmax.f32 %v273_v38, %v290_v44 }
 0x138   : > { %v299_v50 = vmax.f32 %v275_v42, %v291_v46 }
 0x139   : > { %v280_v51 = vpop.f32.mrb[4].mxu0  ;;  %v300_v53 = vmax.f32 %v277_v45, %v292_v48 }
 0x13a   : > { %v281_v55 = vadd.f32 %v967_v47, %v280_v51  ;;  %v282_v56 = vpop.f32.mrb[5].mxu0  ;;  %v321_v57 = vpack.c.bf16 %v299_v50, %v297_v49  ;;  %v983_v49 = vpop.permute.xlu0 %982 }
 0x13b   : > { %v283_v58 = vadd.f32 %v967_v47, %v282_v56  ;;  %v284_v59 = vpop.f32.mrb[6].mxu0  ;;  %v322_v60 = vpack.c.bf16 %v300_v53, %v298_v52  ;;  %v984_v56 = vunpack.i.l.bf16 %v983_v49 }
 0x13c   : > { %v293_v61 = vmul.f32 0.22916667, %v281_v55  ;;  %v285_v62 = vadd.f32 %v968_v54, %v284_v59  ;;  %v286_v63 = vpop.f32.mrb[7].mxu0 }
 0x13d   : > { %v294_v1 = vmul.f32 0.22916667, %v283_v58  ;;  %v287_v2 = vadd.f32 %v968_v54, %v286_v63  ;;  %398 = vmatprep.subr.bf16.mxu1 %v322_v60  ;;  %v985_v60 = vunpack.i.h.bf16 %v983_v49 }
 0x13e   : > { %v295_v3 = vmul.f32 0.22916667, %v285_v62  ;;  %399 = vmatpush1.bf16.msra.mxu1 %v321_v57  ;;  %v301_v5 = vmax.f32 %v281_v55, %v293_v61 }
 0x13f   : > { %v296_v4 = vmul.f32 0.22916667, %v287_v2  ;;  %v302_v7 = vmax.f32 %v283_v58, %v294_v1 }
 0x140   : > { %v303_v6 = vmax.f32 %v285_v62, %v295_v3 }
 0x141   : > { %v304_v8 = vmax.f32 %v287_v2, %v296_v4 }
 0x142   : > { %v323_v9 = vpack.c.bf16 %v303_v6, %v301_v5 }
 0x143   : > { %v324_v10 = vpack.c.bf16 %v304_v8, %v302_v7 }
 0x145   : > { %400 = vmatprep.subr.bf16.mxu1 %v324_v10  ;;  %v988_v10 = vpop.permute.xlu1 %987 }
 0x146   : > { %401 = vmatpush1.bf16.msra.mxu1 %v323_v9 }
 0x149   : > { %876 = vmatmul.mubr.msk.bf16.vlgmr.msra.gmra.mrb[0].mxu1 %vm385_vm2, %v1339_v15  ;;  %v509_v15 = vunpack.c.l.bf16 %v1371_v12 }
 0x14a   : > { %440 = vmatprep.mubr.bf16.mxu1 %v1164_v0 }
 0x151   : > { %877 = vmatmul.mubr.msk.bf16.gmra.mrb[4].mxu1 %vm385_vm2, %v1341_v16  ;;  %v1167_v16 = vmov 64  }
 0x152   : > { %450 = vmatprep.mubr.bf16.mxu1 %v1164_v0  ;;  %991 = vset.pattern.permute.xlu1 %v1167_v16 }
 0x153   : > { %997 = vset.pattern.permute.xlu0 %v1167_v16  ;;  %993 = vperm.xlu1 %991, %v992_v18  }
 0x157   : > { %1003 = vset.pattern.permute.xlu1 %v1166_v21  ;;  %v979_v21 = vunpack.i.h.bf16 %v977_v29 }
 0x159   : > { %878 = vmatmul.mubr.msk.bf16.gmra.mrb[8].mxu1 %vm385_vm2, %v1343_v17  ;;  %v510_v17 = vunpack.c.h.bf16 %v1371_v12 }
 0x15a   : > { %460 = vmatprep.mubr.bf16.mxu1 %v1164_v0 }
 0x15b   : > { %v998_v19 = vpack.i.bf16 %v510_v17, %v509_v15  ;;  %v989_v17 = vunpack.i.l.bf16 %v988_v10 }
 0x15d   : > { %999 = vperm.xlu0 %997, %v998_v19  }
 0x161   : > { %879 = vmatmul.mubr.msk.bf16.gmra.mrb[12].mxu1 %vm385_vm2, %v1353_v26 }
 0x162   : > { %747 = vmatprep.mubr.bf16.mxu1 %v1164_v0 }
 0x21c   : > { %v432_v24 = vpop.f32.mrb[0].mxu1 }
 0x21d   : > { %v433_v25 = vadd.f32 %v973_v22, %v432_v24  ;;  %v434_v26 = vpop.f32.mrb[1].mxu1  ;;  %v990_v24 = vunpack.i.h.bf16 %v988_v10 }
 0x21e   : > { %v435_v27 = vadd.f32 %v973_v22, %v434_v26  ;;  %v436_v28 = vpop.f32.mrb[2].mxu1 }
 0x21f   : > { %v471_v30 = vmul.f32 0.22916667, %v433_v25  ;;  %v437_v31 = vadd.f32 %v974_v23, %v436_v28  ;;  %v438_v32 = vpop.f32.mrb[3].mxu1 }
 0x220   : > { %v472_v33 = vmul.f32 0.22916667, %v435_v27  ;;  %v439_v34 = vadd.f32 %v974_v23, %v438_v32 }
 0x221   : > { %v473_v35 = vmul.f32 0.22916667, %v437_v31  ;;  %v487_v38 = vmax.f32 %v433_v25, %v471_v30 }
 0x222   : > { %v474_v37 = vmul.f32 0.22916667, %v439_v34  ;;  %v488_v40 = vmax.f32 %v435_v27, %v472_v33 }
 0x223   : > { %v489_v39 = vmax.f32 %v437_v31, %v473_v35 }
 0x224   : > { %v490_v41 = vmax.f32 %v439_v34, %v474_v37  ;;  %v442_v42 = vpop.f32.mrb[4].mxu1 }
 0x225   : > { %v511_v43 = vpack.c.bf16 %v489_v39, %v487_v38  ;;  %v443_v44 = vadd.f32 %v978_v36, %v442_v42  ;;  %v444_v45 = vpop.f32.mrb[5].mxu1 }
 0x226   : > { %v445_v46 = vadd.f32 %v978_v36, %v444_v45  ;;  %v446_v47 = vpop.f32.mrb[6].mxu1  ;;  %v512_v48 = vpack.c.bf16 %v490_v41, %v488_v40 }
 0x227   : > { %v475_v50 = vmul.f32 0.22916667, %v443_v44  ;;  %v447_v51 = vadd.f32 %v979_v21, %v446_v47  ;;  %v448_v52 = vpop.f32.mrb[7].mxu1  ;;  %v994_v47 = vpop.permute.xlu1 %993 }
 0x228   : > { %v476_v53 = vmul.f32 0.22916667, %v445_v46  ;;  %v449_v54 = vadd.f32 %v979_v21, %v448_v52  ;;  %556 = vmatprep.subr.bf16.mxu0 %v512_v48  ;;  %v995_v48 = vunpack.i.l.bf16 %v994_v47  ;;  %v996_v49 = vunpack.i.h.bf16 %v994_v47 }
 0x229   : > { %v477_v55 = vmul.f32 0.22916667, %v447_v51  ;;  %557 = vmatpush1.bf16.msra.mxu0 %v511_v43  ;;  %v491_v58 = vmax.f32 %v443_v44, %v475_v50  ;;  %v625_v43 = vld [vmem:[#allocation5 + $0x40] sm:$0xff]  }
 0x22a   : > { %v478_v57 = vmul.f32 0.22916667, %v449_v54  ;;  %v492_v61 = vmax.f32 %v445_v46, %v476_v53  ;;  %v627_v44 = vunpack.c.l.bf16 %v625_v43  ;;  %v628_v45 = vunpack.c.h.bf16 %v625_v43 }
 0x22b   : > { %v493_v59 = vmax.f32 %v447_v51, %v477_v55 }
 0x22c   : > { %v494_v62 = vmax.f32 %v449_v54, %v478_v57  ;;  %v452_v63 = vpop.f32.mrb[8].mxu1  ;;  %v1004_v46 = vpack.i.bf16 %v628_v45, %v627_v44 }
 0x22d   : > { %v513_v1 = vpack.c.bf16 %v493_v59, %v491_v58  ;;  %v453_v2 = vadd.f32 %v984_v56, %v452_v63  ;;  %v454_v3 = vpop.f32.mrb[9].mxu1 }
 0x22e   : > { %v455_v4 = vadd.f32 %v984_v56, %v454_v3  ;;  %v456_v5 = vpop.f32.mrb[10].mxu1  ;;  %v514_v6 = vpack.c.bf16 %v494_v62, %v492_v61  ;;  %1005 = vperm.xlu1 %1003, %v1004_v46  }
 0x22f   : > { %v479_v7 = vmul.f32 0.22916667, %v453_v2  ;;  %v457_v8 = vadd.f32 %v985_v60, %v456_v5  ;;  %v458_v9 = vpop.f32.mrb[11].mxu1 }
 0x230   : > { %v480_v13 = vmul.f32 0.22916667, %v455_v4  ;;  %v459_v14 = vadd.f32 %v985_v60, %v458_v9  ;;  %558 = vmatprep.subr.bf16.mxu0 %v514_v6 }
 0x231   : > { %v481_v15 = vmul.f32 0.22916667, %v457_v8  ;;  %559 = vmatpush1.bf16.msra.mxu0 %v513_v1  ;;  %v495_v18 = vmax.f32 %v453_v2, %v479_v7 }
 0x232   : > { %v482_v16 = vmul.f32 0.22916667, %v459_v14  ;;  %v496_v20 = vmax.f32 %v455_v4, %v480_v13 }
 0x233   : > { %v497_v19 = vmax.f32 %v457_v8, %v481_v15 }
 0x234   : > { %v498_v22 = vmax.f32 %v459_v14, %v482_v16  ;;  %v462_v23 = vpop.f32.mrb[12].mxu1 }
 0x235   : > { %v515_v25 = vpack.c.bf16 %v497_v19, %v495_v18  ;;  %v463_v26 = vadd.f32 %v989_v17, %v462_v23  ;;  %v464_v27 = vpop.f32.mrb[13].mxu1 }
 0x236   : > { %v465_v28 = vadd.f32 %v989_v17, %v464_v27  ;;  %v466_v29 = vpop.f32.mrb[14].mxu1  ;;  %v516_v30 = vpack.c.bf16 %v498_v22, %v496_v20 }
 0x237   : > { %v483_v31 = vmul.f32 0.22916667, %v463_v26  ;;  %v467_v32 = vadd.f32 %v990_v24, %v466_v29  ;;  %v468_v33 = vpop.f32.mrb[15].mxu1 }
 0x238   : > { %v484_v34 = vmul.f32 0.22916667, %v465_v28  ;;  %v469_v35 = vadd.f32 %v990_v24, %v468_v33  ;;  %560 = vmatprep.subr.bf16.mxu0 %v516_v30 }
 0x239   : > { %v485_v36 = vmul.f32 0.22916667, %v467_v32  ;;  %561 = vmatpush1.bf16.msra.mxu0 %v515_v25  ;;  %v499_v38 = vmax.f32 %v463_v26, %v483_v31  ;;  %v702_v26 = vld [vmem:[#allocation5 + $0x48] sm:$0x3] }
 0x23a   : > { %v486_v37 = vmul.f32 0.22916667, %v469_v35  ;;  %v500_v21 = vmax.f32 %v465_v28, %v484_v34  ;;  %v703_v27 = vunpack.c.l.bf16 %v702_v26  ;;  %v1168_v28 = vmov 16  }
 0x23b   : > { %v501_v39 = vmax.f32 %v467_v32, %v485_v36  ;;  %1009 = vset.pattern.permute.xlu1 %v1168_v28  ;;  %1010 = vset.pattern.permute.xlu0 %v1168_v28 }
 0x23c   : > { %v502_v40 = vmax.f32 %v469_v35, %v486_v37  ;;  %708 = vperm.xlu1 %1009, %v703_v27  }
 0x23d   : > { %v517_v41 = vpack.c.bf16 %v501_v39, %v499_v38 }
 0x23e   : > { %v518_v42 = vpack.c.bf16 %v502_v40, %v500_v21 }
 0x240   : > { %562 = vmatprep.subr.bf16.mxu0 %v518_v42 }
 0x241   : > { %563 = vmatpush1.bf16.msra.mxu0 %v517_v41 }
 0x244   : > { %882 = vmatmul.mubr.msk.bf16.vlgmr.msra.gmra.mrb[8].mxu0 %vm549_vm3, %v1369_v11  ;;  %v1000_v11 = vpop.permute.xlu0 %999 }
 0x245   : > { %598 = vmatprep.mubr.bf16.mxu0 %v1164_v0  ;;  %v1001_v59 = vunpack.i.l.bf16 %v1000_v11  ;;  %v1002_v63 = vunpack.i.h.bf16 %v1000_v11 }
 0x24c   : > { %883 = vmatmul.mubr.msk.bf16.gmra.mrb[12].mxu0 %vm549_vm3, %v1371_v12 }
 0x24d   : > { %683 = vmatprep.mubr.bf16.mxu0 %v1164_v0 }
 0x2ad   : > { %v1006_v29 = vpop.permute.xlu1 %1005 }
 0x2ae   : > { %v1007_v30 = vunpack.i.l.bf16 %v1006_v29  ;;  %v1008_v31 = vunpack.i.h.bf16 %v1006_v29 }
 0x317   : > { %v590_v50 = vpop.f32.mrb[8].mxu0 }
 0x318   : > { %v591_v51 = vadd.f32 %v995_v48, %v590_v50  ;;  %v592_v52 = vpop.f32.mrb[9].mxu0 }
 0x319   : > { %v593_v53 = vadd.f32 %v995_v48, %v592_v52  ;;  %v594_v54 = vpop.f32.mrb[10].mxu0 }
 0x31a   : > { %v609_v55 = vmul.f32 0.22916667, %v591_v51  ;;  %v595_v56 = vadd.f32 %v996_v49, %v594_v54  ;;  %v596_v57 = vpop.f32.mrb[11].mxu0 }
 0x31b   : > { %v610_v12 = vmul.f32 0.22916667, %v593_v53  ;;  %v597_v58 = vadd.f32 %v996_v49, %v596_v57  ;;  %v709_v49 = vpop.permute.xlu1 %708 }
 0x31c   : > { %v611_v0 = vmul.f32 0.22916667, %v595_v56  ;;  %v617_v61 = vmax.f32 %v591_v51, %v609_v55 }
 0x31d   : > { %v612_v60 = vmul.f32 0.22916667, %v597_v58  ;;  %v618_v1 = vmax.f32 %v593_v53, %v610_v12 }
 0x31e   : > { %v619_v62 = vmax.f32 %v595_v56, %v611_v0 }
 0x31f   : > { %v620_v2 = vmax.f32 %v597_v58, %v612_v60  ;;  %v600_v3 = vpop.f32.mrb[12].mxu0 }
 0x320   : > { %v629_v4 = vpack.c.bf16 %v619_v62, %v617_v61  ;;  %v601_v5 = vadd.f32 %v1001_v59, %v600_v3  ;;  %v602_v6 = vpop.f32.mrb[13].mxu0 }
 0x321   : > { %v603_v7 = vadd.f32 %v1001_v59, %v602_v6  ;;  %v604_v8 = vpop.f32.mrb[14].mxu0  ;;  %v630_v9 = vpack.c.bf16 %v620_v2, %v618_v1 }
 0x322   : > { %v613_v10 = vmul.f32 0.22916667, %v601_v5  ;;  %v605_v13 = vadd.f32 %v1002_v63, %v604_v8  ;;  %v606_v14 = vpop.f32.mrb[15].mxu0 }
 0x323   : > { %v614_v15 = vmul.f32 0.22916667, %v603_v7  ;;  %v607_v16 = vadd.f32 %v1002_v63, %v606_v14  ;;  %651 = vmatprep.subr.bf16.mxu0 %v630_v9 }
 0x324   : > { %v615_v17 = vmul.f32 0.22916667, %v605_v13  ;;  %652 = vmatpush1.bf16.msra.mxu0 %v629_v4  ;;  %v621_v19 = vmax.f32 %v601_v5, %v613_v10 }
 0x325   : > { %v616_v18 = vmul.f32 0.22916667, %v607_v16  ;;  %v622_v22 = vmax.f32 %v603_v7, %v614_v15 }
 0x326   : > { %v623_v20 = vmax.f32 %v605_v13, %v615_v17 }
 0x327   : > { %v624_v23 = vmax.f32 %v607_v16, %v616_v18 }
 0x328   : > { %v631_v24 = vpack.c.bf16 %v623_v20, %v621_v19 }
 0x329   : > { %v632_v25 = vpack.c.bf16 %v624_v23, %v622_v22 }
 0x32b   : > { %653 = vmatprep.subr.bf16.mxu0 %v632_v25 }
 0x32c   : > { %654 = vmatpush1.bf16.msra.mxu0 %v631_v24 }
 0x32f   : > { %885 = vmatmul.mubr.msk.bf16.vlgmr.msra.gmra.mrb[16].mxu0 %vm385_vm2, %v625_v43 }
 0x402   : > { %v685_v32 = vpop.f32.mrb[16].mxu0 }
 0x403   : > { %v686_v33 = vadd.f32 %v1007_v30, %v685_v32  ;;  %v687_v34 = vpop.f32.mrb[17].mxu0 }
 0x404   : > { %v688_v35 = vadd.f32 %v1007_v30, %v687_v34  ;;  %v689_v36 = vpop.f32.mrb[18].mxu0 }
 0x405   : > { %v694_v37 = vmul.f32 0.22916667, %v686_v33  ;;  %v690_v38 = vadd.f32 %v1008_v31, %v689_v36  ;;  %v691_v39 = vpop.f32.mrb[19].mxu0 }
 0x406   : > { %v695_v21 = vmul.f32 0.22916667, %v688_v35  ;;  %v692_v40 = vadd.f32 %v1008_v31, %v691_v39 }
 0x407   : > { %v696_v41 = vmul.f32 0.22916667, %v690_v38  ;;  %v698_v43 = vmax.f32 %v686_v33, %v694_v37 }
 0x408   : > { %v697_v42 = vmul.f32 0.22916667, %v692_v40  ;;  %v699_v45 = vmax.f32 %v688_v35, %v695_v21 }
 0x409   : > { %v700_v44 = vmax.f32 %v690_v38, %v696_v41 }
 0x40a   : > { %v701_v46 = vmax.f32 %v692_v40, %v697_v42 }
 0x40b   : > { %v704_v47 = vpack.c.bf16 %v700_v44, %v698_v43 }
 0x40c   : > { %v705_v48 = vpack.c.bf16 %v701_v46, %v699_v45 }
 0x40e   : > { %715 = vmatprep.subr.bf16.mxu1 %v705_v48 }
 0x40f   : > { %716 = vmatpush1.bf16.msra.mxu1 %v704_v47 }
 0x412   : > { %886 = vmatmul.mubr.msk.bf16.vlgmr.msra.gmra.mrb[16].mxu1 %vm711_vm4, %v702_v26 }
 0x4e5   : > { %v749_v50 = vpop.f32.mrb[16].mxu1 }
 0x4e6   : > { %v751_v51 = vpop.f32.mrb[17].mxu1  ;;  %v750_v52 = vadd.f32 %v749_v50, %v709_v49 }
 0x4e7   : > { %v753_v53 = vpop.f32.mrb[18].mxu1  ;;  %v752_v54 = vadd.f32 %v751_v51, %v709_v49 }
 0x4e8   : > { %v754_v11 = vpop.f32.mrb[19].mxu1 }
 0x4e9   : > { %v758_v55 = vcombine.low %v750_v52, %v752_v54 }
 0x4eb   : > { %760 = vst [vmem:[%s174_s17] sm:$0xff] %v758_v55 }
 0x4ec   : > { %1101 = shalt.err (!%p1098_p7)
}
 0x4ed   : > { %s1102_s6 = scalar_lea.hbm %s1389_s28, 128  ;;  %s1106_s24 = scalar_lea.hbm %s1435_s2, 256 }
 0x4ee   : > { %p1103_p9 = scmp.ne.s32.totalorder %s1389_s28, %s1102_s6  ;;  %p1107_p0 = scmp.lt.u32.totalorder %s1389_s28, %s1435_s2 }
 0x4ef   : > { %p1108_p11 = scmp.lt.u32.totalorder %s1106_s24, %s1102_s6  ;;  %p1110_p4 = scmp.lt.u32.totalorder %s1102_s6, %s1389_s28 }
 0x4f0   : > { %p1104_p2 = pnand %p1103_p9, %p1276_p12 }
 0x4f1   : > { %p1109_p1 = por %p1108_p11, %p1107_p0 }
 0x4f2   : > { %p1105_p5 = pneg %p1104_p2 }
 0x4f3   : > { %p1111_p6 = por %p1110_p4, %p1109_p1 }
 0x4f5   : > { %p1112_p8 = pnand %p1111_p6, %p1105_p5 }
 0x4f7   : > { %1115 = shalt.err (!%p1112_p8)
}
 0x4f8   : > { %900 = dma.vmem_to_hbm [thread:$0]  (%p1276_p12), %s1391_s27, 128, %s1389_s28, %s762_s30  }
 0x4f9 PF: > { %s788_s26 = sand.u32 1, %s1146_s9   ;;  %p1450_p10 = scmp.ne.s32.totalorder %s1440_s16, 0 }
 0x4fa   : > { %p1451_p13 = scmp.ge.s32.totalorder %s1158_s12, 2  ;;  %s789_s19 = scalar_lea.sflag [#allocation4], %s788_s26 }
 0x4fc   : > { %p911_p3 = pnand %p1451_p13, %p1450_p10 }
 0x4fe   : > { %1141 = dma.done.wait (!%p911_p3), %s789_s19, 128  }
 0x4ff   : > { %1143 = vsyncadd (!%p911_p3), %s789_s19, 4294967168  ;;  %p16_p7 = scmp.ge.s32.totalorder %s1241_s21, 4   ;;  %s1452_s9 = smov %s1150_s10 }
 0x500   : > { %s1453_s10 = smov %s1154_s11  ;;  %s1454_s11 = smov %s1272_s8 }
 0x501   : > { %s1455_s12 = smov %s1241_s21  ;;  %18 = sbr.rel (!%p16_p7) target bundleno = 6 (0x6), region = 77 }
 0x508   :  { %794 = vsyncpa [#allocation3], 1 }
 0x509   :  { %796 = vsyncpa [#allocation3 + $0x1], 1 }
 0x50a   :  { %797 = vsyncpa [#allocation6], 1 }
 0x50b   :  { %798 = vsyncpa [#allocation4], 1 }
 0x50c   :  { %800 = vsyncpa [#allocation4 + $0x1], 1 }

</bundles_post_ra>
